<compile_context>
chip_gen: v5e
topology: v5e:2x2
jax: 0.10.0
libtpu: 0.0.40
codegen_flags: <defaults>
</compile_context>

<pallas_src>
import jax
import jax.numpy as jnp
from jax.experimental import pallas as pl
from jax.experimental.pallas import tpu as pltpu


def _squared_modulus_kernel(x_ref, o_ref):
    # x_ref: (2*TR, TT) input rows (channel pairs on adjacent rows)
    # o_ref: (TR, TT)   output rows
    n_out = o_ref.shape[0]
    n_in = x_ref.shape[0]

    xb = x_ref[...].astype(jnp.float32)   # one dense load, upcast for accuracy
    sq = xb * xb                          # one full-tile VPU multiply

    # Pair-sum of adjacent rows via a tiny 0/1 pairing matrix on the MXU:
    #   P[r, c] = 1 if c in {2r, 2r+1} else 0    ->    out = P @ sq
    # The MXU is idle in this HBM-bound kernel, and this avoids stride-2
    # sublane slicing (rejected by the interpreter, value-level strided slices
    # are not lowerable by Mosaic either).
    row = jax.lax.broadcasted_iota(jnp.int32, (n_out, n_in), 0)
    col = jax.lax.broadcasted_iota(jnp.int32, (n_out, n_in), 1)
    pair = (col == 2 * row) | (col == 2 * row + 1)
    pmat = jnp.where(pair, 1.0, 0.0).astype(jnp.float32)

    out = jnp.dot(
        pmat,
        sq,
        preferred_element_type=jnp.float32,
        precision=jax.lax.Precision.HIGHEST,  # exact: weights are 0/1
    )
    o_ref[...] = out.astype(o_ref.dtype)


def squared_modulus(x, *, time_tile=1024, row_tile=128):
    """x: (B, 2F, T) -> (B, F, T); out[b,f,t] = x[b,2f,t]^2 + x[b,2f+1,t]^2."""
    b, c2, t = x.shape
    assert c2 % 2 == 0, "channel dim must be even (2 * num_filters)"
    f = c2 // 2
    n_out = b * f        # flattened output rows
    n_in = b * c2        # flattened input rows (pairs stay adjacent)

    # Free row-major flatten of batch into the sublane axis.
    x2 = x.reshape(n_in, t)

    # Output-row tile: full extent when small, else a multiple of 8.
    tr = n_out if n_out <= 2 * row_tile else row_tile
    # Time (lane) tile: full extent when small, else a multiple of 128.
    tt = t if t <= time_tile else time_tile

    grid = (pl.cdiv(n_out, tr), pl.cdiv(t, tt))

    itemsize = x.dtype.itemsize
    cost = pl.CostEstimate(
        flops=3 * n_out * t,
        transcendentals=0,
        bytes_accessed=(n_in * t + n_out * t) * itemsize,
    )

    out2 = pl.pallas_call(
        _squared_modulus_kernel,
        out_shape=jax.ShapeDtypeStruct((n_out, t), x.dtype),
        grid=grid,
        in_specs=[pl.BlockSpec((2 * tr, tt), lambda i, j: (i, j))],
        out_specs=pl.BlockSpec((tr, tt), lambda i, j: (i, j)),
        compiler_params=pltpu.CompilerParams(
            dimension_semantics=("parallel", "parallel"),
        ),
        cost_estimate=cost,
    )(x2)

    return out2.reshape(b, f, t)


if __name__ == "__main__":
    key = jax.random.PRNGKey(0)
    B, F, T = 2, 4, 16          # batch=2, num_filters=4 (8 input channels), time=16
    x = jax.random.normal(key, (B, 2 * F, T), dtype=jnp.float32)

    out = squared_modulus(x)
    out = jax.block_until_ready(out)

    # Pure-JAX reference of the PyTorch forward (2 * avgpool(x^2) over channel pairs).
    ref = x[:, 0::2, :] ** 2 + x[:, 1::2, :] ** 2
    assert out.shape == (B, F, T)
    assert out.dtype == x.dtype
    assert jnp.allclose(out, ref, atol=1e-5, rtol=1e-5)

    print("KERNEL_OK")
</pallas_src>

<mosaic_0001>
module attributes {stable_mosaic.version = 11 : i64} {
  func.func @_squared_modulus_kernel(%arg0: i32, %arg1: i32, %arg2: memref<16x16xf32, #tpu.memory_space<vmem>>, %arg3: memref<8x16xf32, #tpu.memory_space<vmem>>) attributes {dimension_semantics = [#tpu.dimension_semantics<parallel>, #tpu.dimension_semantics<parallel>], iteration_bounds = array<i64: 1, 1>, scalar_prefetch = 0 : i64, scratch_operands = 0 : i64, tpu.core_type = #tpu.core_type<tc>, window_params = [{transform_indices = @transform_0, window_bounds = array<i64: 16, 16>}, {transform_indices = @transform_1, window_bounds = array<i64: 8, 16>}]} {
    %c0 = arith.constant 0 : index
    %c0_0 = arith.constant 0 : index
    %0 = vector.load %arg2[%c0, %c0_0] : memref<16x16xf32, #tpu.memory_space<vmem>>, vector<16x16xf32>
    %1 = arith.mulf %0, %0 : vector<16x16xf32>
    %2 = tpu.iota {dimensions = array<i32: 0>} : vector<8x16xi32>
    %3 = tpu.iota {dimensions = array<i32: 1>} : vector<8x16xi32>
    %c2_i32 = arith.constant 2 : i32
    %4 = vector.broadcast %c2_i32 : i32 to vector<8x16xi32>
    %5 = arith.muli %4, %2 : vector<8x16xi32>
    %6 = arith.cmpi eq, %3, %5 : vector<8x16xi32>
    %c2_i32_1 = arith.constant 2 : i32
    %7 = vector.broadcast %c2_i32_1 : i32 to vector<8x16xi32>
    %8 = arith.muli %7, %2 : vector<8x16xi32>
    %c1_i32 = arith.constant 1 : i32
    %9 = vector.broadcast %c1_i32 : i32 to vector<8x16xi32>
    %10 = arith.addi %8, %9 : vector<8x16xi32>
    %11 = arith.cmpi eq, %3, %10 : vector<8x16xi32>
    %12 = arith.ori %6, %11 : vector<8x16xi1>
    %cst = arith.constant 1.000000e+00 : f32
    %cst_2 = arith.constant 0.000000e+00 : f32
    %13 = vector.broadcast %cst : f32 to vector<8x16xf32>
    %14 = vector.broadcast %cst_2 : f32 to vector<8x16xf32>
    %15 = arith.select %12, %13, %14 : vector<8x16xi1>, vector<8x16xf32>
    %cst_3 = arith.constant dense<0.000000e+00> : vector<8x16xf32>
    %16 = tpu.matmul %15, %1, %cst_3 {dimension_numbers = #tpu.dot_dimension_numbers<[1], [0], [0], [1], [0, 0, 1, 1], [], []>, precision = #tpu.contract_precision<fp32>} : vector<8x16xf32>, vector<16x16xf32>, vector<8x16xf32> -> vector<8x16xf32>
    %c0_4 = arith.constant 0 : index
    %c0_5 = arith.constant 0 : index
    %17 = vector.load %arg3[%c0_4, %c0_5] : memref<8x16xf32, #tpu.memory_space<vmem>>, vector<8x16xf32>
    tpu.vector_store %arg3[%c0_4, %c0_5], %16 {strides = array<i32>} : memref<8x16xf32, #tpu.memory_space<vmem>>, vector<8x16xf32>,
    return
  }
  func.func @transform_0(%arg0: i32, %arg1: i32) -> (i32, i32) {
    %c0_i32 = arith.constant 0 : i32
    return %arg0, %arg1 : i32, i32
  }
  func.func @transform_1(%arg0: i32, %arg1: i32) -> (i32, i32) {
    %c0_i32 = arith.constant 0 : i32
    return %arg0, %arg1 : i32, i32
  }
}

</mosaic_0001>

<bundles_post_ra>
// kernel: tpu_custom_call.1
= control target key start
LH: loop header
LB: loop body
LE: loop exit
PB: predicated region body
PF: predicated region fallthrough
CT: control target
= control target key end

     0   :  { %6 = vsyncpa [#allocation3], 0  ;;  %s306_s0 = inlined_call_operand.hbm [shape: f32[16,16], index: 0, kind: input, shape index: {}]   ;;  %s307_s1 = inlined_call_operand.hbm [shape: f32[8,16], index: 1, kind: output, shape index: {}]  }
   0x1   :  { %7 = vsyncpa [#allocation4], 0  ;;  %s12_s8 = sshll.u32 %s306_s0, 4  ;;  %s280_s9 = smov [#allocation2]   ;;  %s13_s8 = int_to_ptr.hbm [resolvable:$true] %s12_s8 }
   0x2   :  { %s14_s10 = sshll.u32 %s280_s9, 4  ;;  %s281_s11 = smov 128   ;;  %s15_s10 = int_to_ptr.vmem [resolvable:$true] %s14_s10 }
   0x3   :  { %s282_s12 = smov 8  }
   0x4   :  { %20 = dma.hbm_to_vmem [thread:$0]  %s13_s8, 256, %s15_s10, [#allocation3], %s281_s11, %s281_s11, %s282_s12  }
   0x5   :  { %276 = dma.done.wait [#allocation3], 256  }
   0x6   :  { %277 = vsyncadd [#allocation3], 4294967040  ;;  %v29_v0 = vlaneseq  ;;  %v26_v5 = vld [vmem:[#allocation2 + $0x8] sm:$0xff]  ;;  %v25_v6 = vld [vmem:[#allocation2] sm:$0xff]  ;;  %vm39_vm2 = vcmask 130048   ;;  %v283_v11 = vmov 0.0  }
   0x7   :  { %v28_v7 = vmul.f32 %v26_v5, %v26_v5  ;;  %v27_v8 = vmul.f32 %v25_v6, %v25_v6  ;;  %s284_s0 = smov [#allocation5]   ;;  %s210_s16 = sshll.u32 %s307_s1, 4  ;;  %s211_s16 = int_to_ptr.hbm [resolvable:$true] %s210_s16 }
   0x8   :  { %v30_v1 = vshrl.u32 %v29_v0, 7  ;;  %v32_v2 = vand.u32 127, %v29_v0  ;;  %s208_s13 = sshll.u32 %s284_s0, 4  ;;  %s209_s13 = int_to_ptr.vmem [resolvable:$true] %s208_s13 }
   0x9   :  { %v57_v9 = vand.u32 4294901760, %v28_v7  ;;  %v59_v10 = vand.u32 4294901760, %v27_v8 }
   0xa   :  { %v33_v3 = vmul.u32 2, %v30_v1 }
   0xb   :  { %v85_v14 = vsub.f32 %v28_v7, %v57_v9  ;;  %58 = vmatpush.msra.mxu0 %v57_v9  ;;  %v91_v15 = vsub.f32 %v27_v8, %v59_v10  ;;  %142 = vmatpush.msra.mxu3 %v57_v9 }
   0xc   :  { %vm34_vm0 = vcmp.eq.s32.totalorder %v32_v2, %v33_v3  ;;  %v35_v4 = vadd.s32 1, %v33_v3 }
   0xd   :  { %117 = vmatpush.msra.mxu2 %v85_v14  ;;  %60 = vmatpush.msra.mxu0 %v59_v10  ;;  %v86_v17 = vand.u32 4294901760, %v85_v14  ;;  %v92_v19 = vand.u32 4294901760, %v91_v15 }
   0xe   :  { %vm36_vm1 = vcmp.eq.s32.totalorder %v32_v2, %v35_v4  ;;  %144 = vmatpush.msra.mxu3 %v59_v10 }
   0xf   :  { %vm37_vm3 = vmor %vm34_vm0, %vm36_vm1  ;;  %120 = vmatpush.msra.mxu2 %v91_v15  ;;  %v87_v20 = vsub.f32 %v85_v14, %v86_v17  ;;  %v93_v22 = vsub.f32 %v91_v15, %v92_v19  ;;  %169 = vmatpush.msrb.mxu0 %v86_v17 }
  0x10   :  { %v38_v12 = vsel %vm37_vm3, 1.0, %v283_v11 }
  0x11   :  { %v41_v13 = vsel %vm39_vm2, %v38_v12, 0  ;;  %v88_v23 = vand.u32 4294901760, %v87_v20  ;;  %v94_v25 = vand.u32 4294901760, %v93_v22  ;;  %173 = vmatpush.msrb.mxu0 %v92_v19 }
  0x12   :  { %v62_v16 = vsub.f32 %v41_v13, %v41_v13 }
  0x13   :  { %89 = vmatpush.msra.mxu1 %v88_v23 }
  0x14   :  { %v63_v18 = vand.u32 4294901760, %v62_v16  ;;  %123 = vmatmul.f32.vlgmr.msra.gmra.mxu2 %v62_v16 }
  0x15   :  { %95 = vmatpush.msra.mxu1 %v94_v25 }
  0x16   :  { %v64_v21 = vsub.f32 %v62_v16, %v63_v18  ;;  %148 = vmatmul.f32.vlgmr.msra.gmra.mxu3 %v63_v18  ;;  %220 = vmatmul.msk.f32.vlgmr.msra.gmra.mxu1 %vm39_vm2, %v38_v12 }
  0x17   :  { %194 = vmatpush.msrb.mxu1 %v57_v9 }
  0x18   :  { %v65_v24 = vand.u32 4294901760, %v64_v21 }
  0x19   :  { %196 = vmatpush.msrb.mxu1 %v59_v10 }
  0x1a   :  { %66 = vmatmul.f32.vlgmr.msra.gmra.mxu0 %v65_v24 }
  0x1e   :  { %222 = vmatmul.msk.f32.vlgmr.msrb.gmra.mxu1 %vm39_vm2, %v38_v12 }
  0x22   :  { %221 = vmatmul.msk.f32.vlgmr.msrb.gmra.mxu0 %vm39_vm2, %v38_v12 }
  0x93   :  { %v98_v27 = vpop.f32.mrf.mxu1 }
  0x97   :  { %v67_v26 = vpop.f32.mrf.mxu0  ;;  %v124_v28 = vpop.f32.mrf.mxu2 }
  0x98   :  { %v99_v29 = vadd.f32 %v98_v27, %v67_v26 }
  0x99   :  { %v149_v30 = vpop.f32.mrf.mxu3 }
  0x9a   :  { %v125_v31 = vadd.f32 %v124_v28, %v99_v29 }
  0x9b   :  { %v199_v35 = vpop.f32.mrf.mxu1 }
  0x9c   :  { %v150_v32 = vadd.f32 %v149_v30, %v125_v31 }
  0x9f   :  { %v176_v33 = vpop.f32.mrf.mxu0 }
  0xa0   :  { %v177_v34 = vadd.f32 %v176_v33, %v150_v32 }
  0xa2   :  { %v200_v36 = vadd.f32 %v199_v35, %v177_v34 }
  0xa4   :  { %202 = vst.msk [vmem:[#allocation5] sm:$0xff] %vm39_vm2, %v200_v36 }
  0xa5   :  { %213 = dma.vmem_to_hbm [thread:$0]  %s209_s13, 128, %s211_s16, [#allocation4]  }
  0xa6   :  { %278 = dma.done.wait [#allocation4], 128  }
  0xa7   :  { %279 = vsyncadd [#allocation4], 4294967168 }
  0xa8   :  { %218 = vsyncpa [#allocation3], 1 }
  0xa9   :  { %219 = vsyncpa [#allocation4], 1 }

</bundles_post_ra>
